<compile_context>
chip_gen: v6e
topology: v6e:2x2x1
jax: 0.10.0
libtpu: 0.0.40
codegen_flags: <defaults>
</compile_context>

<pallas_src>
import math
from typing import NamedTuple

import jax
import jax.numpy as jnp
from jax.experimental import pallas as pl
from jax.experimental.pallas import tpu as pltpu


# --------------------------------------------------------------------------- #
# Small helpers
# --------------------------------------------------------------------------- #
def _round_up(x, m):
    return ((x + m - 1) // m) * m


def _pad_to(a, shape):
    pads = [(0, s - d) for d, s in zip(a.shape, shape)]
    if any(p for _, p in pads):
        a = jnp.pad(a, pads)
    return a


def _vmem_capacity_bytes():
    """Per-TensorCore VMEM capacity; falls back to 64 MiB (v7x) if unknown."""
    try:
        info = pltpu.get_tpu_info()
        for attr in ("vmem_capacity_bytes", "vmem_bytes", "vmem_size_bytes"):
            v = getattr(info, attr, None)
            if v:
                return int(v)
    except Exception:
        pass
    return 64 * 1024 * 1024


def _divisor_tiles(hidden_p):
    """Multiples of 128 that evenly divide hidden_p, descending."""
    m = hidden_p // 128
    return [128 * d for d in range(m, 0, -1) if m % d == 0]


def _vmem_block_bytes(tile_b, tile_h, n_h, in_dim_p, out_dim_p,
                      x_bytes, w_bytes, out_bytes):
    """Estimate of VMEM used by pipelined blocks + scratch + intermediates."""
    db = 2  # Pallas double-buffers each auto-pipelined block
    est = db * tile_b * in_dim_p * x_bytes            # x block
    est += db * in_dim_p * tile_h * w_bytes           # W1 block
    est += db * tile_h * 4                            # b1 (f32)
    est += db * tile_h * out_dim_p * w_bytes          # W2 block
    est += db * out_dim_p * 4                         # b2 (f32)
    est += db * tile_b * out_dim_p * out_bytes        # out block
    if n_h > 1:
        est += tile_b * out_dim_p * 4                 # f32 accumulator scratch
    est += tile_b * tile_h * (4 + w_bytes)            # f32 hidden + MXU copy
    return est


def _pick_tile_b(B, tile_b_req, row_align):
    small = _round_up(B, row_align)
    req = max(row_align, _round_up(tile_b_req, row_align))
    if small <= 128:
        # Tiny batch: one minimally-padded tile.
        return min(small, req)
    # Candidates: multiples of 128 up to the request (>= 128).
    hi = max(128, 128 * (req // 128))
    best_key, best = None, 128
    for c in range(128, hi + 1, 128):
        Bp = _round_up(B, c)
        n_tiles = Bp // c
        # Prefer >=2 batch tiles (shards the "parallel" axis across both v7x
        # TensorCores), then minimal zero padding of B, then the larger tile.
        key = (0 if n_tiles >= 2 else 1, Bp, -c)
        if best_key is None or key < best_key:
            best_key, best = key, c
    return best


def _select_tiles(B, in_dim_p, hidden_p, out_dim_p, x_bytes, w_bytes, out_bytes,
                  tile_b_req, tile_h_req, row_align, budget, weight_resident):
    tile_b = _pick_tile_b(B, tile_b_req, row_align)
    tile_h_cap = max(128, _round_up(min(tile_h_req, hidden_p), 128))
    while True:
        # 1) Weight-resident fast path: a single hidden step so W1/W2 block
        #    indices never change -> no per-batch-tile weight re-DMA.
        if weight_resident is not False:
            w_db = 2 * (in_dim_p * hidden_p + hidden_p * out_dim_p) * w_bytes
            est = _vmem_block_bytes(tile_b, hidden_p, 1, in_dim_p, out_dim_p,
                                    x_bytes, w_bytes, out_bytes)
            if weight_resident is True or (w_db <= budget // 2 and est <= budget):
                return tile_b, hidden_p
        # 2) Hidden-tiled path: largest 128-multiple divisor of hidden_p that
        #    honors the requested cap and fits the VMEM budget.
        for th in _divisor_tiles(hidden_p):
            if th > tile_h_cap:
                continue
            n_h = hidden_p // th
            est = _vmem_block_bytes(tile_b, th, n_h, in_dim_p, out_dim_p,
                                    x_bytes, w_bytes, out_bytes)
            if est <= budget:
                return tile_b, th
        # 3) Nothing fits with this batch tile: shrink it and retry.
        new_tb = max(row_align, _round_up(tile_b // 2, row_align))
        if new_tb == tile_b:
            return tile_b, 128
        tile_b = new_tb


# --------------------------------------------------------------------------- #
# Kernels
# --------------------------------------------------------------------------- #
def _mlp_kernel_fused(x_ref, w1_ref, b1_ref, w2_ref, b2_ref, o_ref):
    """Single hidden step: both matmuls in one grid step, weights resident."""
    x = x_ref[...].astype(w1_ref.dtype)
    h = jnp.dot(x, w1_ref[...], preferred_element_type=jnp.float32)
    h = jnp.clip(h + b1_ref[...], 0.0, 6.0)          # ReLU6 in f32
    h = h.astype(w2_ref.dtype)
    out = jnp.dot(h, w2_ref[...], preferred_element_type=jnp.float32)
    o_ref[...] = (out + b2_ref[...]).astype(o_ref.dtype)


def _mlp_kernel_tiled(x_ref, w1_ref, b1_ref, w2_ref, b2_ref, o_ref, acc_ref):
    """Hidden dim streamed: grid = (batch tiles [parallel], hidden tiles [arbitrary]).

    The hidden dim is the N dim of matmul-1 and the K dim of matmul-2; a f32
    VMEM accumulator holds the (tile_b, out_dim_p) output tile across K steps.
    """
    h_idx = pl.program_id(1)

    x = x_ref[...].astype(w1_ref.dtype)
    h = jnp.dot(x, w1_ref[...], preferred_element_type=jnp.float32)
    h = jnp.clip(h + b1_ref[...], 0.0, 6.0)          # ReLU6 in f32, pre-downcast
    h = h.astype(w2_ref.dtype)
    partial = jnp.dot(h, w2_ref[...], preferred_element_type=jnp.float32)

    @pl.when(h_idx == 0)
    def _first():
        acc_ref[...] = partial                        # no zero-init RMW pass

    @pl.when(h_idx > 0)
    def _accum():
        acc_ref[...] += partial

    @pl.when(h_idx == pl.num_programs(1) - 1)
    def _finalize():
        o_ref[...] = (acc_ref[...] + b2_ref[...]).astype(o_ref.dtype)


# --------------------------------------------------------------------------- #
# Parameter preparation (pad + cast once, not per call)
# --------------------------------------------------------------------------- #
class MLPParams(NamedTuple):
    w1: jax.Array   # (in_dim_p, hidden_p), compute dtype
    b1: jax.Array   # (1, hidden_p), float32
    w2: jax.Array   # (hidden_p, out_dim_p), compute dtype
    b2: jax.Array   # (1, out_dim_p), float32
    in_dim: int
    hidden_dim: int
    out_dim: int


def prepare_mlp_params(w1, b1, w2, b2, compute_dtype=jnp.bfloat16):
    """Pad feature dims to multiples of 128 and cast weights to the MXU dtype
    once.  Weight layout: (in_features, out_features)."""
    in_dim, hidden_dim = w1.shape
    out_dim = w2.shape[1]
    in_dim_p = _round_up(in_dim, 128)
    hidden_p = _round_up(hidden_dim, 128)
    out_dim_p = _round_up(out_dim, 128)
    return MLPParams(
        w1=_pad_to(w1, (in_dim_p, hidden_p)).astype(compute_dtype),
        b1=_pad_to(b1.reshape(1, hidden_dim), (1, hidden_p)).astype(jnp.float32),
        w2=_pad_to(w2, (hidden_p, out_dim_p)).astype(compute_dtype),
        b2=_pad_to(b2.reshape(1, out_dim), (1, out_dim_p)).astype(jnp.float32),
        in_dim=in_dim, hidden_dim=hidden_dim, out_dim=out_dim)


# --------------------------------------------------------------------------- #
# Forward
# --------------------------------------------------------------------------- #
def mlp_forward(x, params: MLPParams, *, tile_b=256, tile_h=512,
                weight_resident=None):
    """Fused MLP forward: clip(x @ W1 + b1, 0, 6) @ W2 + b2."""
    B, in_dim = x.shape
    assert in_dim == params.in_dim, "x feature dim mismatch"
    in_dim_p, hidden_p = params.w1.shape
    out_dim_p = params.w2.shape[1]
    out_dtype = x.dtype

    w_bytes = jnp.dtype(params.w1.dtype).itemsize
    x_bytes = jnp.dtype(x.dtype).itemsize
    out_bytes = jnp.dtype(out_dtype).itemsize
    row_align = 16 if w_bytes < 4 else 8

    # Generation-aware VMEM budget (v7x: 64 MiB/TC; v5e/v6e: 128 MiB).
    vmem_cap = _vmem_capacity_bytes()
    vmem_limit = max(32 * 1024 * 1024,
                     min(vmem_cap * 7 // 8, vmem_cap - 8 * 1024 * 1024))
    block_budget = int(vmem_limit * 0.85)   # headroom for compiler scratch

    tile_b, tile_h = _select_tiles(
        B, in_dim_p, hidden_p, out_dim_p, x_bytes, w_bytes, out_bytes,
        tile_b, tile_h, row_align, block_budget, weight_resident)
    Bp = _round_up(B, tile_b)
    n_h = hidden_p // tile_h

    # x is padded (cheap) but kept in its original dtype; cast happens in-kernel.
    x_p = _pad_to(x, (Bp, in_dim_p))

    if n_h == 1:
        # Weight-resident fused path: batch-only grid, constant W1/W2 indices.
        out_p = pl.pallas_call(
            _mlp_kernel_fused,
            out_shape=jax.ShapeDtypeStruct((Bp, out_dim_p), out_dtype),
            grid_spec=pltpu.PrefetchScalarGridSpec(
                num_scalar_prefetch=0,
                grid=(Bp // tile_b,),
                in_specs=[
                    pl.BlockSpec((tile_b, in_dim_p), lambda i: (i, 0)),     # x
                    pl.BlockSpec((in_dim_p, hidden_p), lambda i: (0, 0)),   # W1
                    pl.BlockSpec((1, hidden_p), lambda i: (0, 0)),          # b1
                    pl.BlockSpec((hidden_p, out_dim_p), lambda i: (0, 0)),  # W2
                    pl.BlockSpec((1, out_dim_p), lambda i: (0, 0)),         # b2
                ],
                out_specs=pl.BlockSpec((tile_b, out_dim_p), lambda i: (i, 0)),
            ),
            compiler_params=pltpu.CompilerParams(
                dimension_semantics=("parallel",),
                vmem_limit_bytes=int(vmem_limit),
            ),
        )(x_p, params.w1, params.b1, params.w2, params.b2)
    else:
        # Hidden-tiled path: stream W1/W2 in hidden tiles, f32 accumulator.
        # (If profiling shows exposed DMA on W2 with >=4 hidden steps on
        #  v5e/v6e, pipeline_mode=pl.Buffered(3) on the W2 spec is an option.)
        out_p = pl.pallas_call(
            _mlp_kernel_tiled,
            out_shape=jax.ShapeDtypeStruct((Bp, out_dim_p), out_dtype),
            grid_spec=pltpu.PrefetchScalarGridSpec(
                num_scalar_prefetch=0,
                grid=(Bp // tile_b, n_h),
                in_specs=[
                    pl.BlockSpec((tile_b, in_dim_p), lambda i, h: (i, 0)),    # x
                    pl.BlockSpec((in_dim_p, tile_h), lambda i, h: (0, h)),    # W1 N-tile
                    pl.BlockSpec((1, tile_h), lambda i, h: (0, h)),           # b1 tile
                    pl.BlockSpec((tile_h, out_dim_p), lambda i, h: (h, 0)),   # W2 K-tile
                    pl.BlockSpec((1, out_dim_p), lambda i, h: (0, 0)),        # b2
                ],
                out_specs=pl.BlockSpec((tile_b, out_dim_p), lambda i, h: (i, 0)),
                scratch_shapes=[pltpu.VMEM((tile_b, out_dim_p), jnp.float32)],
            ),
            compiler_params=pltpu.CompilerParams(
                dimension_semantics=("parallel", "arbitrary"),
                vmem_limit_bytes=int(vmem_limit),
            ),
        )(x_p, params.w1, params.b1, params.w2, params.b2)

    return out_p[:B, :params.out_dim]


# --------------------------------------------------------------------------- #
# Init matching PyTorch nn.Linear (kaiming_uniform_(a=sqrt(5)) + uniform bias)
# --------------------------------------------------------------------------- #
def init_linear_params(key, in_features, out_features, dtype=jnp.float32):
    """Both weight and bias reduce to U(-1/sqrt(fan_in), 1/sqrt(fan_in))."""
    kw, kb = jax.random.split(key)
    bound = 1.0 / math.sqrt(in_features)
    w = jax.random.uniform(kw, (in_features, out_features), dtype,
                           minval=-bound, maxval=bound)
    b = jax.random.uniform(kb, (out_features,), dtype,
                           minval=-bound, maxval=bound)
    return w, b


def mlp_reference(x, w1, b1, w2, b2):
    h = jnp.clip(x @ w1 + b1, 0.0, 6.0)
    return h @ w2 + b2


# --------------------------------------------------------------------------- #
# Self-test
# --------------------------------------------------------------------------- #
if __name__ == "__main__":
    # --- 1) Toy, unaligned shapes consistent with the PyTorch module --------
    in_dim, hidden_dim, out_dim, batch = 16, 32, 8, 4
    kx, k1, k2 = jax.random.split(jax.random.PRNGKey(0), 3)
    x = jax.random.normal(kx, (batch, in_dim), jnp.float32)
    w1, b1 = init_linear_params(k1, in_dim, hidden_dim)
    w2, b2 = init_linear_params(k2, hidden_dim, out_dim)
    ref = mlp_reference(x, w1, b1, w2, b2)

    params_f32 = prepare_mlp_params(w1, b1, w2, b2, compute_dtype=jnp.float32)
    out_f32 = jax.block_until_ready(mlp_forward(x, params_f32))
    assert out_f32.shape == (batch, out_dim)
    assert jnp.allclose(out_f32, ref, atol=1e-5, rtol=1e-5), "f32 mismatch"

    params_bf16 = prepare_mlp_params(w1, b1, w2, b2, compute_dtype=jnp.bfloat16)
    out_bf16 = jax.block_until_ready(mlp_forward(x, params_bf16))
    assert jnp.allclose(out_bf16, ref, atol=5e-2, rtol=5e-2), "bf16 mismatch"

    # --- 2) Multi batch-tile + multi hidden-step (accumulator) path ---------
    in_dim, hidden_dim, out_dim, batch = 128, 384, 128, 192
    kx, k1, k2 = jax.random.split(jax.random.PRNGKey(1), 3)
    x = jax.random.normal(kx, (batch, in_dim), jnp.float32)
    w1, b1 = init_linear_params(k1, in_dim, hidden_dim)
    w2, b2 = init_linear_params(k2, hidden_dim, out_dim)
    ref = mlp_reference(x, w1, b1, w2, b2)

    params_f32 = prepare_mlp_params(w1, b1, w2, b2, compute_dtype=jnp.float32)
    out = jax.block_until_ready(
        mlp_forward(x, params_f32, tile_h=128, weight_resident=False))
    assert out.shape == (batch, out_dim)
    assert jnp.allclose(out, ref, atol=1e-4, rtol=1e-4), "tiled f32 mismatch"

    params_bf16 = prepare_mlp_params(w1, b1, w2, b2, compute_dtype=jnp.bfloat16)
    out = jax.block_until_ready(
        mlp_forward(x, params_bf16, tile_h=128, weight_resident=False))
    assert jnp.allclose(out, ref, atol=5e-2, rtol=5e-2), "tiled bf16 mismatch"

    # --- 3) Default (auto) path on the same shapes: weight-resident fused ---
    out = jax.block_until_ready(mlp_forward(x, params_bf16))
    assert jnp.allclose(out, ref, atol=5e-2, rtol=5e-2), "resident bf16 mismatch"

    print("KERNEL_OK")
</pallas_src>

<mosaic_0001>
module attributes {stable_mosaic.version = 11 : i64} {
  func.func @_mlp_kernel_fused(%arg0: i32, %arg1: memref<8x128xf32, #tpu.memory_space<vmem>>, %arg2: memref<128x128xf32, #tpu.memory_space<vmem>>, %arg3: memref<1x128xf32, #tpu.memory_space<vmem>>, %arg4: memref<128x128xf32, #tpu.memory_space<vmem>>, %arg5: memref<1x128xf32, #tpu.memory_space<vmem>>, %arg6: memref<8x128xf32, #tpu.memory_space<vmem>>) attributes {dimension_semantics = [#tpu.dimension_semantics<parallel>], iteration_bounds = array<i64: 1>, scalar_prefetch = 0 : i64, scratch_operands = 0 : i64, tpu.core_type = #tpu.core_type<tc>, window_params = [{transform_indices = @transform_0, window_bounds = array<i64: 8, 128>}, {pipeline_mode = #tpu.pipeline_mode<synchronous>, transform_indices = @transform_1, window_bounds = array<i64: 128, 128>}, {pipeline_mode = #tpu.pipeline_mode<synchronous>, transform_indices = @transform_2, window_bounds = array<i64: 1, 128>}, {pipeline_mode = #tpu.pipeline_mode<synchronous>, transform_indices = @transform_3, window_bounds = array<i64: 128, 128>}, {pipeline_mode = #tpu.pipeline_mode<synchronous>, transform_indices = @transform_4, window_bounds = array<i64: 1, 128>}, {transform_indices = @transform_5, window_bounds = array<i64: 8, 128>}]} {
    %c0 = arith.constant 0 : index
    %c0_0 = arith.constant 0 : index
    %0 = vector.load %arg1[%c0, %c0_0] : memref<8x128xf32, #tpu.memory_space<vmem>>, vector<8x128xf32>
    %c0_1 = arith.constant 0 : index
    %c0_2 = arith.constant 0 : index
    %1 = vector.load %arg2[%c0_1, %c0_2] : memref<128x128xf32, #tpu.memory_space<vmem>>, vector<128x128xf32>
    %cst = arith.constant dense<0.000000e+00> : vector<8x128xf32>
    %2 = tpu.matmul %0, %1, %cst {dimension_numbers = #tpu.dot_dimension_numbers<[1], [0], [0], [1], [0, 0, 1, 1], [], []>} : vector<8x128xf32>, vector<128x128xf32>, vector<8x128xf32> -> vector<8x128xf32>
    %c0_3 = arith.constant 0 : index
    %c0_4 = arith.constant 0 : index
    %3 = vector.load %arg3[%c0_3, %c0_4] : memref<1x128xf32, #tpu.memory_space<vmem>>, vector<1x128xf32>
    %4 = vector.broadcast %3 : vector<1x128xf32> to vector<8x128xf32>
    %5 = arith.addf %2, %4 : vector<8x128xf32>
    %cst_5 = arith.constant 0.000000e+00 : f32
    %cst_6 = arith.constant 6.000000e+00 : f32
    %6 = vector.broadcast %cst_5 : f32 to vector<8x128xf32>
    %7 = arith.maximumf %6, %5 : vector<8x128xf32>
    %8 = vector.broadcast %cst_6 : f32 to vector<8x128xf32>
    %9 = arith.minimumf %8, %7 : vector<8x128xf32>
    %c0_7 = arith.constant 0 : index
    %c0_8 = arith.constant 0 : index
    %10 = vector.load %arg4[%c0_7, %c0_8] : memref<128x128xf32, #tpu.memory_space<vmem>>, vector<128x128xf32>
    %cst_9 = arith.constant dense<0.000000e+00> : vector<8x128xf32>
    %11 = tpu.matmul %9, %10, %cst_9 {dimension_numbers = #tpu.dot_dimension_numbers<[1], [0], [0], [1], [0, 0, 1, 1], [], []>} : vector<8x128xf32>, vector<128x128xf32>, vector<8x128xf32> -> vector<8x128xf32>
    %c0_10 = arith.constant 0 : index
    %c0_11 = arith.constant 0 : index
    %12 = vector.load %arg5[%c0_10, %c0_11] : memref<1x128xf32, #tpu.memory_space<vmem>>, vector<1x128xf32>
    %13 = vector.broadcast %12 : vector<1x128xf32> to vector<8x128xf32>
    %14 = arith.addf %11, %13 : vector<8x128xf32>
    %c0_12 = arith.constant 0 : index
    %c0_13 = arith.constant 0 : index
    %15 = vector.load %arg6[%c0_12, %c0_13] : memref<8x128xf32, #tpu.memory_space<vmem>>, vector<8x128xf32>
    tpu.vector_store %arg6[%c0_12, %c0_13], %14 {strides = array<i32>} : memref<8x128xf32, #tpu.memory_space<vmem>>, vector<8x128xf32>,
    return
  }
  func.func @transform_0(%arg0: i32) -> (i32, i32) {
    %c0_i32 = arith.constant 0 : i32
    %c0_i32_0 = arith.constant 0 : i32
    return %arg0, %c0_i32 : i32, i32
  }
  func.func @transform_1(%arg0: i32) -> (i32, i32) {
    %c0_i32 = arith.constant 0 : i32
    %c0_i32_0 = arith.constant 0 : i32
    %c0_i32_1 = arith.constant 0 : i32
    return %c0_i32, %c0_i32_0 : i32, i32
  }
  func.func @transform_2(%arg0: i32) -> (i32, i32) {
    %c0_i32 = arith.constant 0 : i32
    %c0_i32_0 = arith.constant 0 : i32
    %c0_i32_1 = arith.constant 0 : i32
    return %c0_i32, %c0_i32_0 : i32, i32
  }
  func.func @transform_3(%arg0: i32) -> (i32, i32) {
    %c0_i32 = arith.constant 0 : i32
    %c0_i32_0 = arith.constant 0 : i32
    %c0_i32_1 = arith.constant 0 : i32
    return %c0_i32, %c0_i32_0 : i32, i32
  }
  func.func @transform_4(%arg0: i32) -> (i32, i32) {
    %c0_i32 = arith.constant 0 : i32
    %c0_i32_0 = arith.constant 0 : i32
    %c0_i32_1 = arith.constant 0 : i32
    return %c0_i32, %c0_i32_0 : i32, i32
  }
  func.func @transform_5(%arg0: i32) -> (i32, i32) {
    %c0_i32 = arith.constant 0 : i32
    %c0_i32_0 = arith.constant 0 : i32
    return %arg0, %c0_i32 : i32, i32
  }
}

</mosaic_0001>

<bundles_post_ra>
// kernel: tpu_custom_call.1
= control target key start
LH: loop header
LB: loop body
LE: loop exit
PB: predicated region body
PF: predicated region fallthrough
CT: control target
= control target key end

     0   :  { %10 = vsyncpa [#allocation3], 0  ;;  %s556_s0 = inlined_call_operand.hbm [shape: f32[8,128], index: 0, kind: input, shape index: {}]   ;;  %s557_s1 = inlined_call_operand.hbm [shape: f32[128,128], index: 1, kind: input, shape index: {}]   ;;  %s558_s2 = inlined_call_operand.vmem [shape: f32[1,128], index: 2, kind: input, shape index: {}]   ;;  %s559_s3 = inlined_call_operand.hbm [shape: f32[128,128], index: 3, kind: input, shape index: {}]   ;;  %s560_s4 = inlined_call_operand.vmem [shape: f32[1,128], index: 4, kind: input, shape index: {}]   ;;  %s561_s5 = inlined_call_operand.hbm [shape: f32[8,128], index: 5, kind: output, shape index: {}]  }
   0x1   :  { %11 = vsyncpa [#allocation6], 0 }
   0x2   :  { %12 = vsyncpa [#allocation4], 0  ;;  %s466_s18 = smov [#allocation5]  }
   0x3   :  { %s28_s19 = sshll.u32 %s466_s18, 4  ;;  %s29_s19 = int_to_ptr.vmem [resolvable:$true] %s28_s19 }
   0x4   :  { %s388_s20 = scalar_lea.vmem %s29_s19, 2048  ;;  %p393_p1 = scmp.lt.s32.totalorder %s29_s19, %s29_s19 }
   0x5   :  { %p389_p0 = scmp.ne.s32.totalorder %s29_s19, %s388_s20  ;;  %p394_p2 = scmp.lt.s32.totalorder %s388_s20, %s388_s20 }
   0x7   :  { %p395_p3 = por %p394_p2, %p393_p1 }
   0x9   :  { %p396_p4 = pnand %p395_p3, %p389_p0 }
   0xb   :  { %399 = shalt.err (!%p396_p4)
}
   0xc   :  { %s467_s21 = smov 128   ;;  %s468_s22 = smov 8  }
   0xd   :  { %34 = dma.hbm_to_vmem [thread:$0]  %s557_s1, 2048, %s29_s19, [#allocation6], %s467_s21, %s467_s21, %s468_s22  }
   0xe   :  { %s469_s25 = smov [#allocation2]   ;;  %s470_s27 = smov [#allocation7]  }
   0xf   :  { %s19_s26 = sshll.u32 %s469_s25, 4  ;;  %s42_s28 = sshll.u32 %s470_s27, 4  ;;  %s20_s26 = int_to_ptr.vmem [resolvable:$true] %s19_s26  ;;  %s43_s28 = int_to_ptr.vmem [resolvable:$true] %s42_s28 }
  0x10   :  { %s408_s29 = scalar_lea.vmem %s20_s26, 128  ;;  %p413_p6 = scmp.lt.s32.totalorder %s20_s26, %s20_s26 }
  0x11   :  { %p409_p5 = scmp.ne.s32.totalorder %s20_s26, %s408_s29  ;;  %p414_p7 = scmp.lt.s32.totalorder %s408_s29, %s408_s29 }
  0x13   :  { %p415_p8 = por %p414_p7, %p413_p6 }
  0x15   :  { %p416_p9 = pnand %p415_p8, %p409_p5 }
  0x17   :  { %419 = shalt.err (!%p416_p9)
}
  0x18   :  { %22 = dma.hbm_to_vmem [thread:$0]  %s556_s0, 128, %s20_s26, [#allocation3]  }
  0x19   :  { %s428_s7 = scalar_lea.vmem %s43_s28, 2048  ;;  %p433_p11 = scmp.lt.s32.totalorder %s43_s28, %s43_s28 }
  0x1a   :  { %p429_p10 = scmp.ne.s32.totalorder %s43_s28, %s428_s7  ;;  %p434_p12 = scmp.lt.s32.totalorder %s428_s7, %s428_s7 }
  0x1c   :  { %p435_p13 = por %p434_p12, %p433_p11 }
  0x1e   :  { %p436_p0 = pnand %p435_p13, %p429_p10 }
  0x20   :  { %439 = shalt.err (!%p436_p0)
}
  0x21   :  { %48 = dma.hbm_to_vmem [thread:$0]  %s559_s3, 2048, %s43_s28, [#allocation6], %s467_s21, %s467_s21, %s468_s22  }
  0x22   :  { %460 = dma.done.wait [#allocation3], 128  }
  0x23   :  { %461 = vsyncadd [#allocation3], 4294967168 }
  0x24   :  { %462 = dma.done.wait [#allocation6], 4096  }
  0x25   :  { %463 = vsyncadd [#allocation6], 4294963200  ;;  %v471_v0 = vmov 0.0   ;;  %vm472_vm0 = vmmov 0   ;;  %v76_v1 = vld [vmem:[#allocation5 + $0x78] sm:$0xff]  ;;  %v75_v2 = vld [vmem:[#allocation5 + $0x70] sm:$0xff] }
  0x26   :  { %302 = vmatprep.subr.mxu0 %v471_v0  ;;  %334 = vmatprep.mubr.msk.f32.mxu0 %vm472_vm0, %v471_v0  ;;  %v74_v3 = vld [vmem:[#allocation5 + $0x68] sm:$0xff]  ;;  %v73_v4 = vld [vmem:[#allocation5 + $0x60] sm:$0xff]  ;;  %v171_v5 = vld [vmem:[#allocation7 + $0x78] sm:$0xff]  ;;  %s473_s11 = smov [#allocation8]  }
  0x27   :  { %337 = vmatprep.subr.mxu1 %v471_v0  ;;  %369 = vmatprep.mubr.msk.f32.mxu1 %vm472_vm0, %v471_v0  ;;  %v72_v6 = vld [vmem:[#allocation5 + $0x58] sm:$0xff]  ;;  %v170_v7 = vld [vmem:[#allocation7 + $0x70] sm:$0xff]  ;;  %v169_v8 = vld [vmem:[#allocation7 + $0x68] sm:$0xff]  ;;  %s256_s12 = sshll.u32 %s473_s11, 4  ;;  %s257_s12 = int_to_ptr.vmem [resolvable:$true] %s256_s12 }
  0x28   :  { %303 = vmatpush3.msra.mxu0 %v76_v1  ;;  %338 = vmatpush3.msra.mxu1 %v171_v5  ;;  %v71_v9 = vld [vmem:[#allocation5 + $0x50] sm:$0xff]  ;;  %v168_v10 = vld [vmem:[#allocation7 + $0x60] sm:$0xff]  ;;  %v70_v11 = vld [vmem:[#allocation5 + $0x48] sm:$0xff]  ;;  %s440_s13 = scalar_lea.vmem %s257_s12, 128  ;;  %p445_p2 = scmp.lt.s32.totalorder %s257_s12, %s257_s12 }
  0x29   :  { %304 = vmatprep.subr.mxu0 %v471_v0  ;;  %339 = vmatprep.subr.mxu1 %v471_v0  ;;  %v167_v12 = vld [vmem:[#allocation7 + $0x58] sm:$0xff]  ;;  %v69_v13 = vld [vmem:[#allocation5 + $0x40] sm:$0xff]  ;;  %v166_v14 = vld [vmem:[#allocation7 + $0x50] sm:$0xff]  ;;  %p441_p1 = scmp.ne.s32.totalorder %s257_s12, %s440_s13  ;;  %p446_p3 = scmp.lt.s32.totalorder %s440_s13, %s440_s13 }
  0x2a   :  { %305 = vmatpush3.msra.mxu0 %v75_v2  ;;  %340 = vmatpush3.msra.mxu1 %v170_v7  ;;  %v68_v15 = vld [vmem:[#allocation5 + $0x38] sm:$0xff]  ;;  %v165_v16 = vld [vmem:[#allocation7 + $0x48] sm:$0xff]  ;;  %v67_v17 = vld [vmem:[#allocation5 + $0x30] sm:$0xff] }
  0x2b   :  { %306 = vmatprep.subr.mxu0 %v471_v0  ;;  %341 = vmatprep.subr.mxu1 %v471_v0  ;;  %v164_v18 = vld [vmem:[#allocation7 + $0x40] sm:$0xff]  ;;  %v66_v19 = vld [vmem:[#allocation5 + $0x28] sm:$0xff]  ;;  %v163_v20 = vld [vmem:[#allocation7 + $0x38] sm:$0xff]  ;;  %p447_p4 = por %p446_p3, %p445_p2 }
  0x2c   :  { %307 = vmatpush3.msra.mxu0 %v74_v3  ;;  %342 = vmatpush3.msra.mxu1 %v169_v8  ;;  %v65_v21 = vld [vmem:[#allocation5 + $0x20] sm:$0xff]  ;;  %v162_v22 = vld [vmem:[#allocation7 + $0x30] sm:$0xff]  ;;  %v64_v23 = vld [vmem:[#allocation5 + $0x18] sm:$0xff] }
  0x2d   :  { %308 = vmatprep.subr.mxu0 %v471_v0  ;;  %343 = vmatprep.subr.mxu1 %v471_v0  ;;  %v161_v24 = vld [vmem:[#allocation7 + $0x28] sm:$0xff]  ;;  %v63_v25 = vld [vmem:[#allocation5 + $0x10] sm:$0xff]  ;;  %v160_v26 = vld [vmem:[#allocation7 + $0x20] sm:$0xff]  ;;  %p448_p5 = pnand %p447_p4, %p441_p1 }
  0x2e   :  { %309 = vmatpush3.msra.mxu0 %v73_v4  ;;  %344 = vmatpush3.msra.mxu1 %v168_v10  ;;  %v62_v27 = vld [vmem:[#allocation5 + $0x8] sm:$0xff]  ;;  %v61_v28 = vld [vmem:[#allocation5] sm:$0xff]  ;;  %v60_v29 = vld [vmem:[#allocation2] sm:$0xff] }
  0x2f   :  { %310 = vmatprep.subr.mxu0 %v471_v0  ;;  %345 = vmatprep.subr.mxu1 %v471_v0  ;;  %v159_v30 = vld [vmem:[#allocation7 + $0x18] sm:$0xff]  ;;  %v158_v31 = vld [vmem:[#allocation7 + $0x10] sm:$0xff]  ;;  %v157_v32 = vld [vmem:[#allocation7 + $0x8] sm:$0xff] }
  0x30   :  { %311 = vmatpush3.msra.mxu0 %v72_v6  ;;  %346 = vmatpush3.msra.mxu1 %v167_v12  ;;  %v156_v33 = vld [vmem:[#allocation7] sm:$0xff]  ;;  %v266_v34 = vld [vmem:[%s558_s2] ss:$0 sm:$0xff] }
  0x31   :  { %312 = vmatprep.subr.mxu0 %v471_v0  ;;  %347 = vmatprep.subr.mxu1 %v471_v0  ;;  %v267_v40 = vld [vmem:[%s560_s4] ss:$0 sm:$0xff] }
  0x32   :  { %313 = vmatpush3.msra.mxu0 %v71_v9  ;;  %348 = vmatpush3.msra.mxu1 %v166_v14 }
  0x33   :  { %314 = vmatprep.subr.mxu0 %v471_v0  ;;  %349 = vmatprep.subr.mxu1 %v471_v0 }
  0x34   :  { %315 = vmatpush3.msra.mxu0 %v70_v11  ;;  %350 = vmatpush3.msra.mxu1 %v165_v16 }
  0x35   :  { %316 = vmatprep.subr.mxu0 %v471_v0  ;;  %351 = vmatprep.subr.mxu1 %v471_v0 }
  0x36   :  { %317 = vmatpush3.msra.mxu0 %v69_v13  ;;  %352 = vmatpush3.msra.mxu1 %v164_v18 }
  0x37   :  { %318 = vmatprep.subr.mxu0 %v471_v0  ;;  %353 = vmatprep.subr.mxu1 %v471_v0 }
  0x38   :  { %319 = vmatpush3.msra.mxu0 %v68_v15  ;;  %354 = vmatpush3.msra.mxu1 %v163_v20 }
  0x39   :  { %320 = vmatprep.subr.mxu0 %v471_v0  ;;  %355 = vmatprep.subr.mxu1 %v471_v0 }
  0x3a   :  { %321 = vmatpush3.msra.mxu0 %v67_v17  ;;  %356 = vmatpush3.msra.mxu1 %v162_v22 }
  0x3b   :  { %322 = vmatprep.subr.mxu0 %v471_v0  ;;  %357 = vmatprep.subr.mxu1 %v471_v0 }
  0x3c   :  { %323 = vmatpush3.msra.mxu0 %v66_v19  ;;  %358 = vmatpush3.msra.mxu1 %v161_v24 }
  0x3d   :  { %324 = vmatprep.subr.mxu0 %v471_v0  ;;  %359 = vmatprep.subr.mxu1 %v471_v0 }
  0x3e   :  { %325 = vmatpush3.msra.mxu0 %v65_v21  ;;  %360 = vmatpush3.msra.mxu1 %v160_v26 }
  0x3f   :  { %326 = vmatprep.subr.mxu0 %v471_v0  ;;  %361 = vmatprep.subr.mxu1 %v471_v0 }
  0x40   :  { %327 = vmatpush3.msra.mxu0 %v64_v23  ;;  %362 = vmatpush3.msra.mxu1 %v159_v30 }
  0x41   :  { %328 = vmatprep.subr.mxu0 %v471_v0  ;;  %363 = vmatprep.subr.mxu1 %v471_v0 }
  0x42   :  { %329 = vmatpush3.msra.mxu0 %v63_v25  ;;  %364 = vmatpush3.msra.mxu1 %v158_v31 }
  0x43   :  { %330 = vmatprep.subr.mxu0 %v471_v0  ;;  %365 = vmatprep.subr.mxu1 %v471_v0 }
  0x44   :  { %331 = vmatpush3.msra.mxu0 %v62_v27  ;;  %366 = vmatpush3.msra.mxu1 %v157_v32 }
  0x45   :  { %332 = vmatprep.subr.mxu0 %v471_v0  ;;  %367 = vmatprep.subr.mxu1 %v471_v0 }
  0x46   :  { %333 = vmatpush3.msra.mxu0 %v61_v28  ;;  %368 = vmatpush3.msra.mxu1 %v156_v33 }
  0x47   :  { %335 = vmatmul.mubr.f32.vlgmr.msra.gmra.mxu0 %v60_v29 }
 0x107   :  { %v150_v35 = vpop.f32.mrf.mxu0 }
 0x108   :  { %v151_v36 = vadd.f32 %v266_v34, %v150_v35 }
 0x109   :  { %v336_v37 = vpop.f32.mrf.mxu0 }
 0x10a   :  { %v154_v38 = vmax.f32 %v151_v36, 0.0 }
 0x10c   :  { %v155_v39 = vmin.f32 %v154_v38, 6.0 }
 0x10e   :  { %370 = vmatmul.mubr.f32.vlgmr.msra.gmra.mxu1 %v155_v39 }
 0x1ce   :  { %v245_v41 = vpop.f32.mrf.mxu1 }
 0x1cf   :  { %v246_v42 = vadd.f32 %v267_v40, %v245_v41 }
 0x1d0   :  { %v371_v43 = vpop.f32.mrf.mxu1 }
 0x1d1   :  { %249 = vst [vmem:[#allocation8] sm:$0xff] %v246_v42 }
 0x1d2   :  { %451 = shalt.err (!%p448_p5)
}
 0x1d3   :  { %259 = dma.vmem_to_hbm [thread:$0]  %s257_s12, 128, %s561_s5, [#allocation4]  }
 0x1d4   :  { %464 = dma.done.wait [#allocation4], 128  }
 0x1d5   :  { %465 = vsyncadd [#allocation4], 4294967168 }
 0x1d6   :  { %263 = vsyncpa [#allocation3], 1 }
 0x1d7   :  { %264 = vsyncpa [#allocation6], 1 }
 0x1d8   :  { %265 = vsyncpa [#allocation4], 1 }

</bundles_post_ra>
